<compile_context>
chip_gen: v7x
topology: tpu7x:2x2x1
jax: 0.10.0
libtpu: 0.0.40
codegen_flags: <defaults>
</compile_context>

<pallas_src>
import jax
import jax.numpy as jnp
from jax import lax
from jax.experimental import pallas as pl
from jax.experimental.pallas import tpu as pltpu


def _softmax_neg_energy(energy):
    """softmax(rowmax(E) - E) computed as exp(rowmin(E) - E) / rowsum (f32 in/out)."""
    row_min = jnp.min(energy, axis=-1, keepdims=True)
    p = jnp.exp(row_min - energy)
    denom = jnp.sum(p, axis=-1, keepdims=True)
    # Exact reciprocal: runs once per (C,1) vector; exactness keeps parity with f32 ref.
    return p * pl.reciprocal(denom, approx=False)


def _make_fused_kernel(mm_dtype):
    """Single-call path: whole (C, N) batch slab resident; x read from HBM once."""
    def kernel(gamma_ref, x_ref, out_ref):
        x = x_ref[0]                                        # (C, N), native dtype
        xm = x.astype(mm_dtype)
        # energy[c, d] = sum_n x[c, n] * x[d, n]: contract the lane axis of both
        # operands directly — no explicit transpose is materialized.
        energy = lax.dot_general(
            xm, xm, dimension_numbers=(((1,), (1,)), ((), ())),
            preferred_element_type=jnp.float32)             # (C, C) f32
        att = _softmax_neg_energy(energy)
        ax = jnp.dot(att.astype(mm_dtype), xm, preferred_element_type=jnp.float32)
        # Residual added in f32 before the final downcast; reuse the live x.
        out_ref[0] = (gamma_ref[0] * ax + x.astype(jnp.float32)).astype(out_ref.dtype)
    return kernel


def _make_energy_kernel(C, TN, N, mm_dtype, use_scratch):
    """Pass 1: accumulate the channel Gram matrix over N tiles, then softmax it.

    Accumulates directly into the resident output block when it is f32
    (use_scratch=False); otherwise into a f32 VMEM scratch and casts once at the end.
    The ragged last tile is masked in-kernel (no host-side padding).
    """
    rem = N % TN

    def kernel(x_ref, att_ref, *scratch):
        n = pl.program_id(1)
        acc_ref = scratch[0] if use_scratch else att_ref    # (1, C, C), f32 either way

        @pl.when(n == 0)
        def _():
            acc_ref[0] = jnp.zeros((C, C), jnp.float32)

        x = x_ref[0]                                        # (C, TN), native dtype
        if rem:  # static: only emitted when N is not a multiple of TN
            col = lax.broadcasted_iota(jnp.int32, (C, TN), 1)
            x = jnp.where(col < (N - n * TN), x, jnp.zeros_like(x))
        xm = x.astype(mm_dtype)
        acc_ref[0] += lax.dot_general(
            xm, xm, dimension_numbers=(((1,), (1,)), ((), ())),
            preferred_element_type=jnp.float32)

        @pl.when(n == pl.num_programs(1) - 1)
        def _():
            att_ref[0] = _softmax_neg_energy(acc_ref[0]).astype(att_ref.dtype)

    return kernel


def _make_apply_kernel(mm_dtype):
    """Pass 2: out_tile = gamma * (attention @ x_tile) + x_tile (f32 accumulate)."""
    def kernel(gamma_ref, att_ref, x_ref, out_ref):
        x = x_ref[0]                                        # (C, TN)
        att = att_ref[0]                                    # (C, C), already mm_dtype
        ax = jnp.dot(att.astype(mm_dtype), x.astype(mm_dtype),
                     preferred_element_type=jnp.float32)
        out_ref[0] = (gamma_ref[0] * ax + x.astype(jnp.float32)).astype(out_ref.dtype)
    return kernel


def cam_module_forward(x, gamma, *, tn_max=None, matmul_in_bf16=False,
                       force_two_pass=False):
    """x: (B, C, D, H, W), gamma: (1,) f32 -> (B, C, D, H, W). Matches CAM_Module.forward."""
    B, C, D, H, W = x.shape
    N = D * H * W
    x_flat = x.reshape(B, C, N)

    itemsize = jnp.dtype(x.dtype).itemsize
    mm_dtype = (jnp.bfloat16
                if (matmul_in_bf16 and jnp.dtype(x.dtype) == jnp.dtype(jnp.float32))
                else x.dtype)
    mm_itemsize = jnp.dtype(mm_dtype).itemsize
    use_scratch = jnp.dtype(mm_dtype) != jnp.dtype(jnp.float32)

    # Generation-aware VMEM budgets (v5e/v6e: 128 MiB physical, v7x: 64 MiB).
    try:
        vmem_cap = int(pltpu.get_tpu_info().vmem_capacity_bytes)
    except Exception:
        vmem_cap = 64 << 20  # conservative (v7x) fallback
    if vmem_cap >= (96 << 20):
        default_tn_cap, vmem_budget, fused_budget = 4096, 96 << 20, 64 << 20
    else:
        default_tn_cap, vmem_budget, fused_budget = 2048, 48 << 20, 24 << 20
    vmem_ceiling = max(vmem_cap - (8 << 20), 16 << 20)

    # --- Fused single-call fast path: one HBM read of x, no second pass.
    fused_need = (4 * C * N * itemsize        # in + out blocks, double-buffered
                  + 2 * C * N * 4             # f32 matmul / residual intermediates
                  + C * N * mm_itemsize       # optional cast copy
                  + 4 * C * C * 4             # energy / softmax working set
                  + (2 << 20))
    if (not force_two_pass) and fused_need <= fused_budget:
        vmem_limit = int(min(max(fused_need + (4 << 20), 16 << 20), vmem_ceiling))
        out_flat = pl.pallas_call(
            _make_fused_kernel(mm_dtype),
            out_shape=jax.ShapeDtypeStruct((B, C, N), x.dtype),
            grid=(B,),
            in_specs=[
                pl.BlockSpec(memory_space=pltpu.MemorySpace.SMEM),   # gamma (1,)
                pl.BlockSpec((1, C, N), lambda b: (b, 0, 0)),
            ],
            out_specs=pl.BlockSpec((1, C, N), lambda b: (b, 0, 0)),
            compiler_params=pltpu.CompilerParams(
                dimension_semantics=("parallel",),
                vmem_limit_bytes=vmem_limit),
            cost_estimate=pl.CostEstimate(
                flops=4 * B * C * C * N + 3 * B * C * N,
                transcendentals=B * C * C,
                bytes_accessed=2 * B * C * N * itemsize),
        )(gamma, x_flat)
        return out_flat.reshape(B, C, D, H, W)

    # --- Two-pass, N-tiled path: flat VMEM footprint for arbitrarily large N.
    tn_cap = tn_max if tn_max is not None else default_tn_cap
    tn_cap = max(128, (int(tn_cap) // 128) * 128)
    n128 = pl.cdiv(N, 128) * 128
    att_bytes = C * C * mm_itemsize
    reserve = 2 * C * C * 4 + 2 * att_bytes + (2 << 20)      # (C,C) working + resident att
    avail = max(vmem_budget - reserve, 4 << 20)
    tn_fit = max(avail // (4 * C * itemsize) // 128, 1) * 128  # 4 = in+out double-buffered
    TN = int(max(128, min(tn_cap, tn_fit, n128)))
    NT = int(pl.cdiv(N, TN))

    vmem_limit = int(min(max(4 * C * TN * itemsize + reserve + (4 << 20), 16 << 20),
                         vmem_ceiling))

    # Pass 1: attention = softmax(rowmax(E) - E), E = X @ X^T over channels,
    # accumulated over lane-dense N tiles (ragged tail masked in-kernel).
    attention = pl.pallas_call(
        _make_energy_kernel(C, TN, N, mm_dtype, use_scratch),
        out_shape=jax.ShapeDtypeStruct((B, C, C), mm_dtype),
        grid=(B, NT),
        in_specs=[pl.BlockSpec((1, C, TN), lambda b, n: (b, 0, n))],
        out_specs=pl.BlockSpec((1, C, C), lambda b, n: (b, 0, 0)),
        scratch_shapes=([pltpu.VMEM((1, C, C), jnp.float32)] if use_scratch else []),
        compiler_params=pltpu.CompilerParams(
            dimension_semantics=("parallel", "arbitrary"),
            vmem_limit_bytes=vmem_limit),
        cost_estimate=pl.CostEstimate(
            flops=2 * B * C * C * N,
            transcendentals=B * C * C,
            bytes_accessed=B * C * N * itemsize + B * C * C * mm_itemsize),
    )(x_flat)

    # Pass 2: out = gamma * (attention @ X) + X, streamed over N (fully parallel).
    # Output emitted directly at (B, C, N); boundary tail writes are masked by Pallas
    # and the matmul is column-local, so no host pad/slice is needed.
    out_flat = pl.pallas_call(
        _make_apply_kernel(mm_dtype),
        out_shape=jax.ShapeDtypeStruct((B, C, N), x.dtype),
        grid=(B, NT),
        in_specs=[
            pl.BlockSpec(memory_space=pltpu.MemorySpace.SMEM),        # gamma (1,)
            pl.BlockSpec((1, C, C), lambda b, n: (b, 0, 0)),          # attention (resident per b)
            pl.BlockSpec((1, C, TN), lambda b, n: (b, 0, n)),         # x tile
        ],
        out_specs=pl.BlockSpec((1, C, TN), lambda b, n: (b, 0, n)),   # lane-dense stores
        compiler_params=pltpu.CompilerParams(
            dimension_semantics=("parallel", "parallel"),
            vmem_limit_bytes=vmem_limit),
        cost_estimate=pl.CostEstimate(
            flops=2 * B * C * C * N + 3 * B * C * N,
            transcendentals=0,
            bytes_accessed=2 * B * C * N * itemsize + B * C * C * mm_itemsize),
    )(gamma, attention, x_flat)

    return out_flat.reshape(B, C, D, H, W)


def cam_module_reference(x, gamma):
    """Pure-JAX reference of the intended PyTorch forward."""
    B, C, D, H, W = x.shape
    xf = x.astype(jnp.float32).reshape(B, C, -1)
    energy = jnp.einsum("bcn,bdn->bcd", xf, xf)
    energy_new = jnp.max(energy, axis=-1, keepdims=True) - energy
    attention = jax.nn.softmax(energy_new, axis=-1)
    out = jnp.einsum("bcd,bdn->bcn", attention, xf).reshape(B, C, D, H, W)
    return gamma[0] * out + x.astype(jnp.float32)


if __name__ == "__main__":
    key = jax.random.PRNGKey(0)

    # Small 3-D feature map; D*H*W = 128 exercises the fused single-call path.
    B, C, D, H, W = 2, 4, 4, 4, 8
    x = jax.random.normal(key, (B, C, D, H, W), dtype=jnp.float32)

    gamma0 = jnp.zeros((1,), dtype=jnp.float32)       # module init: gamma = zeros(1)
    out0 = jax.block_until_ready(cam_module_forward(x, gamma0))
    assert out0.shape == x.shape
    assert jnp.allclose(out0, cam_module_reference(x, gamma0), atol=1e-4, rtol=1e-4)

    gamma1 = jnp.full((1,), 0.5, dtype=jnp.float32)   # exercise the attention path
    out1 = jax.block_until_ready(cam_module_forward(x, gamma1))
    assert jnp.allclose(out1, cam_module_reference(x, gamma1), atol=1e-4, rtol=1e-4)

    # Ragged N (=64), forced through the two-pass path: exercises the in-kernel
    # tail-mask in pass 1 and the masked boundary writes in pass 2 (no host pad/slice).
    x2 = jax.random.normal(jax.random.PRNGKey(1), (2, 4, 4, 4, 4), dtype=jnp.float32)
    out2 = jax.block_until_ready(
        cam_module_forward(x2, gamma1, force_two_pass=True, tn_max=128))
    assert jnp.allclose(out2, cam_module_reference(x2, gamma1), atol=1e-4, rtol=1e-4)

    # Same ragged shape through the fused path.
    out2f = jax.block_until_ready(cam_module_forward(x2, gamma1))
    assert jnp.allclose(out2f, cam_module_reference(x2, gamma1), atol=1e-4, rtol=1e-4)

    # Multi-tile accumulation with a ragged tail (N=160, TN=128 -> NT=2, rem=32), B=1.
    x3 = jax.random.normal(jax.random.PRNGKey(2), (1, 4, 4, 5, 8), dtype=jnp.float32)
    out3 = jax.block_until_ready(
        cam_module_forward(x3, gamma1, force_two_pass=True, tn_max=128))
    assert jnp.allclose(out3, cam_module_reference(x3, gamma1), atol=1e-4, rtol=1e-4)

    # bf16 inputs through the two-pass path (exercises the f32 scratch accumulator
    # and the bf16-resident attention block).
    x4 = jax.random.normal(jax.random.PRNGKey(3), (1, 16, 4, 4, 8),
                           dtype=jnp.float32).astype(jnp.bfloat16)
    out4 = jax.block_until_ready(
        cam_module_forward(x4, gamma1, force_two_pass=True, tn_max=128))
    assert jnp.allclose(out4.astype(jnp.float32),
                        cam_module_reference(x4, gamma1), atol=2e-2, rtol=2e-2)

    # Optional bf16-MXU compute knob for f32 inputs (v5e-oriented); just verify it runs.
    out5 = jax.block_until_ready(cam_module_forward(x, gamma1, matmul_in_bf16=True))
    assert out5.shape == x.shape and bool(jnp.all(jnp.isfinite(out5)))

    print("KERNEL_OK")
</pallas_src>

<mosaic_0001>
module attributes {stable_mosaic.version = 11 : i64} {
  func.func @kernel(%arg0: i32, %arg1: memref<1xf32, #tpu.memory_space<smem>>, %arg2: memref<1x4x128xf32, #tpu.memory_space<vmem>>, %arg3: memref<1x4x128xf32, #tpu.memory_space<vmem>>) attributes {dimension_semantics = [#tpu.dimension_semantics<parallel>], iteration_bounds = array<i64: 2>, scalar_prefetch = 0 : i64, scratch_operands = 0 : i64, tpu.core_type = #tpu.core_type<tc>, window_params = [{transform_indices = @transform_0, window_bounds = array<i64: 1>}, {transform_indices = @transform_1, window_bounds = array<i64: 1, 4, 128>}, {transform_indices = @transform_2, window_bounds = array<i64: 1, 4, 128>}]} {
    %c0 = arith.constant 0 : index
    %c0_0 = arith.constant 0 : index
    %c0_1 = arith.constant 0 : index
    %0 = vector.load %arg2[%c0, %c0_0, %c0_1] : memref<1x4x128xf32, #tpu.memory_space<vmem>>, vector<1x4x128xf32>
    %1 = vector.shape_cast %0 : vector<1x4x128xf32> to vector<4x128xf32>
    %cst = arith.constant dense<0.000000e+00> : vector<4x4xf32>
    %2 = tpu.matmul %1, %1, %cst {dimension_numbers = #tpu.dot_dimension_numbers<[1], [1], [0], [0], [0, 0, 1, 0], [], []>} : vector<4x128xf32>, vector<4x128xf32>, vector<4x4xf32> -> vector<4x4xf32>
    %cst_2 = arith.constant dense<0x7F800000> : vector<4xf32>
    %3 = vector.multi_reduction <minimumf>, %2, %cst_2 [1] : vector<4x4xf32> to vector<4xf32>
    %4 = vector.shape_cast %3 : vector<4xf32> to vector<4x1xf32>
    %5 = vector.broadcast %4 : vector<4x1xf32> to vector<4x4xf32>
    %6 = arith.subf %5, %2 : vector<4x4xf32>
    %7 = math.exp %6 : vector<4x4xf32>
    %cst_3 = arith.constant dense<0.000000e+00> : vector<4xf32>
    %8 = vector.multi_reduction <add>, %7, %cst_3 [1] : vector<4x4xf32> to vector<4xf32>
    %9 = vector.shape_cast %8 : vector<4xf32> to vector<4x1xf32>
    %10 = tpu.reciprocal %9 : vector<4x1xf32> -> vector<4x1xf32>
    %11 = vector.broadcast %10 : vector<4x1xf32> to vector<4x4xf32>
    %12 = arith.mulf %7, %11 : vector<4x4xf32>
    %cst_4 = arith.constant dense<0.000000e+00> : vector<4x128xf32>
    %13 = tpu.matmul %12, %1, %cst_4 {dimension_numbers = #tpu.dot_dimension_numbers<[1], [0], [0], [1], [0, 0, 1, 1], [], []>} : vector<4x4xf32>, vector<4x128xf32>, vector<4x128xf32> -> vector<4x128xf32>
    %c0_5 = arith.constant 0 : index
    %14 = memref.load %arg1[%c0_5] : memref<1xf32, #tpu.memory_space<smem>>
    %15 = vector.broadcast %14 : f32 to vector<4x128xf32>
    %16 = arith.mulf %15, %13 : vector<4x128xf32>
    %17 = arith.addf %16, %1 : vector<4x128xf32>
    %c0_6 = arith.constant 0 : index
    %c0_7 = arith.constant 0 : index
    %c0_8 = arith.constant 0 : index
    %18 = vector.load %arg3[%c0_6, %c0_7, %c0_8] : memref<1x4x128xf32, #tpu.memory_space<vmem>>, vector<1x4x128xf32>
    %19 = vector.shape_cast %18 : vector<1x4x128xf32> to vector<4x128xf32>
    %20 = vector.shape_cast %17 : vector<4x128xf32> to vector<1x4x128xf32>
    tpu.vector_store %arg3[%c0_6, %c0_7, %c0_8], %20 {strides = array<i32>} : memref<1x4x128xf32, #tpu.memory_space<vmem>>, vector<1x4x128xf32>,
    return
  }
  func.func @transform_0(%arg0: i32) -> i32 {
    %c0_i32 = arith.constant 0 : i32
    %c0_i32_0 = arith.constant 0 : i32
    return %c0_i32 : i32
  }
  func.func @transform_1(%arg0: i32) -> (i32, i32, i32) {
    %c0_i32 = arith.constant 0 : i32
    %c0_i32_0 = arith.constant 0 : i32
    %c0_i32_1 = arith.constant 0 : i32
    return %arg0, %c0_i32, %c0_i32_0 : i32, i32, i32
  }
  func.func @transform_2(%arg0: i32) -> (i32, i32, i32) {
    %c0_i32 = arith.constant 0 : i32
    %c0_i32_0 = arith.constant 0 : i32
    %c0_i32_1 = arith.constant 0 : i32
    return %arg0, %c0_i32, %c0_i32_0 : i32, i32, i32
  }
}

</mosaic_0001>

<bundles_post_ra>
// kernel: tpu_custom_call.1
= control target key start
LH: loop header
LB: loop body
LE: loop exit
PB: predicated region body
PF: predicated region fallthrough
CT: control target
= control target key end

     0   :  { %s775_s0 = inlined_call_operand.<no memory space> [shape: f32[1], index: 0, kind: input, shape index: {}]   ;;  %s776_s1 = inlined_call_operand.hbm [shape: f32[2,4,128], index: 1, kind: input, shape index: {}]   ;;  %s777_s2 = inlined_call_operand.hbm [shape: f32[2,4,128], index: 2, kind: output, shape index: {}]  }
   0x1   :  { %7 = sst [smem:[#allocation2]] %s775_s0 }
   0x2   :  { %8 = vsyncpa [#allocation4], 0 }
   0x3   :  { %10 = vsyncpa [#allocation4 + $0x1], 0 }
   0x4   :  { %11 = vsyncpa [#allocation5], 0 }
   0x5   :  { %13 = vsyncpa [#allocation5 + $0x1], 0  ;;  %s610_s11 = smov 0   ;;  %s612_s12 = smov 0  }
   0x6   :  { %s614_s13 = smov 0   ;;  %s616_s14 = smov 0  }
   0x7 LB: > { %s631_s0 = sadd.s32 4294967295, %s586_s14   ;;  %s410_s15 = sadd.s32 4294967294, %s586_s14   ;;  %s586_s14 = sphi %s616_s14, %s792_s14   ;;  %s582_s13 = sphi %s614_s13, %s791_s13   ;;  %s578_s12 = sphi %s612_s12, %s790_s12   ;;  %s574_s11 = sphi %s610_s11, %s789_s11  }
   0x8   : > { %s635_s16 = sadd.s32 1, %s586_s14   ;;  %s47_s17 = sadd.s32 1, %s582_s13 }
   0x9   : > { %s44_s18 = ssub.s32 %s586_s14, %s635_s16  ;;  %p54_p0 = scmp.ne.s32.totalorder %s582_s13, %s578_s12 }
   0xa   : > { %p45_p1 = scmp.eq.s32.totalorder %s44_s18, 0  ;;  %p55_p2 = scmp.eq.s32.totalorder %s586_s14, 0 }
   0xb   : > { %p60_p3 = scmp.ne.s32.totalorder %s578_s12, %s574_s11  ;;  %p61_p4 = scmp.eq.s32.totalorder %s631_s0, 0 }
   0xc   : > { %s647_s19 = scalar_select %p45_p1, %s582_s13, %s47_s17  }
   0xd   : > { %p649_p5 = por %p55_p2, %p54_p0  ;;  %p653_p6 = por %p61_p4, %p60_p3 }
   0xe   : > { %p84_p7 = scmp.eq.s32.totalorder %s631_s0, 1  ;;  %p90_p8 = scmp.eq.s32.totalorder %s410_s15, 1 }
   0xf   : > { %p450_p10 = scmp.lt.s32.totalorder %s586_s14, 2  ;;  %s113_s24 = sand.u32 1, %s582_s13  }
  0x10   : > { %p660_p11 = por %p84_p7, %p54_p0  ;;  %p664_p12 = por %p90_p8, %p60_p3 }
  0x11   : > { %s414_s25 = sshll.u32 %s586_s14, 6  ;;  %s413_s26 = sshll.u32 %s113_s24, 2 }
  0x12   : > { %s781_s22 = scalar_select %p660_p11, 1, 0 }
  0x13   : > { %s782_s23 = scalar_select %p664_p12, 1, 0 }
  0x14   : > { %s673_s29 = scalar_lea.hbm %s776_s1, %s414_s25  ;;  %s117_s30 = scalar_lea.vmem [#allocation3], %s413_s26 }
  0x15   : > { %s124_s3 = sshll.u32 %s117_s30, 4  ;;  %p677_p13 = pnand %p450_p10, %p649_p5  ;;  %s681_s3 = int_to_ptr.vmem [resolvable:$true] %s124_s3 }
  0x16   : > { %s114_s5 = scalar_lea.sflag [#allocation4], %s113_s24  ;;  %s490_s6 = scalar_lea.hbm %s673_s29, 64 }
  0x17   : > { %p491_p2 = scmp.ne.s32.totalorder %s673_s29, %s490_s6  ;;  %p492_p3 = pneg %p677_p13 }
  0x18   : > { %s495_s9 = scalar_lea.hbm %s776_s1, 128  ;;  %p496_p5 = scmp.lt.u32.totalorder %s673_s29, %s776_s1 }
  0x19   : > { %p493_p4 = pnand %p492_p3, %p491_p2  ;;  %p497_p8 = scmp.lt.u32.totalorder %s495_s9, %s490_s6 }
  0x1a   : > { %p499_p9 = scmp.lt.u32.totalorder %s490_s6, %s673_s29 }
  0x1b   : > { %p494_p7 = pneg %p493_p4  ;;  %p498_p10 = por %p497_p8, %p496_p5 }
  0x1d   : > { %p500_p0 = por %p499_p9, %p498_p10 }
  0x1f   : > { %p501_p1 = pnand %p500_p0, %p494_p7 }
  0x21   : > { %504 = shalt.err (!%p501_p1)
}
  0x22   : > { %s505_s17 = scalar_lea.vmem %s681_s3, 64  ;;  %s588_s18 = smov [#allocation3]  }
  0x23   : > { %p506_p2 = scmp.ne.s32.totalorder %s681_s3, %s505_s17  ;;  %s510_s20 = sshll.u32 %s588_s18, 4  ;;  %s511_s20 = int_to_ptr.vmem [resolvable:$false] %s510_s20 }
  0x24   : > { %s512_s24 = scalar_lea.vmem %s511_s20, 128  ;;  %p513_p11 = scmp.lt.s32.totalorder %s681_s3, %s511_s20 }
  0x25   : > { %p508_p4 = pnand %p506_p2, %p492_p3  ;;  %p514_p5 = scmp.lt.s32.totalorder %s512_s24, %s505_s17 }
  0x27   : > { %p509_p12 = pneg %p508_p4  ;;  %p515_p8 = por %p514_p5, %p513_p11 }
  0x29   : > { %p516_p9 = pnand %p515_p8, %p509_p12 }
  0x2b   : > { %519 = shalt.err (!%p516_p9)
}
  0x2c   : > { %445 = dma.hbm_to_vmem [thread:$0]  (!%p677_p13), %s673_s29, 64, %s681_s3, %s114_s5  }
  0x2d   : > { %p784_p0 = scmp.lt.s32.totalorder %s586_s14, 3  ;;  %p785_p1 = scmp.ge.s32.totalorder %s586_s14, 1 }
  0x2f   : > { %p130_p3 = pnand %p785_p1, %p784_p0 }
  0x30   : > { %s715_s25 = sand.u32 (!%p130_p3), 1, %s578_s12  }
  0x31   : > { %133 = sbr.rel (%p130_p3) target bundleno = 819 (0x333), region = 28  ;;  %s416_s26 = sshll.u32 (!%p130_p3), %s715_s25, 2 }
  0x32   : > { %s136_s27 = scalar_lea.sflag (!%p130_p3), [#allocation4], %s715_s25  ;;  %s139_s28 = scalar_lea.vmem (!%p130_p3), [#allocation3], %s416_s26 }
  0x38   : > { %565 = dma.done.wait (%p653_p6), %s136_s27, 64  }
  0x39   : > { %567 = vsyncadd (%p653_p6), %s136_s27, 4294967232  ;;  %v589_v0 = vmov 0.0   ;;  %vm590_vm0 = vmmov 0   ;;  %v160_v1 = vld [vmem:[%s139_s28] sm:$0xf]  ;;  %vm231_vm1 = vcmask 27648  }
  0x3a   : > { %428 = vmatprep.subr.mxu0 %v589_v0  ;;  %430 = vmatprep.mubr.msk.f32.mxu0 %vm590_vm0, %v589_v0  ;;  %vm247_vm2 = vcmask 1043456   ;;  %vm243_vm3 = vcmask 31744   ;;  %s321_s21 = sld [smem:[#allocation2]]  ;;  %s421_s29 = sshll.u32 %s631_s0, 6 }
  0x3b   : > { %433 = vmatprep.subr.mxu1 %v589_v0  ;;  %435 = vmatprep.mubr.msk.f32.mxu1 %vm590_vm0, %v589_v0  ;;  %s159_s30 = scalar_lea.vmem [#allocation6], %s416_s26  ;;  %s731_s6 = scalar_lea.hbm %s777_s2, %s421_s29 }
  0x3c   : > { %429 = vmatpush3.xpose.msra.mxu0 %v160_v1  ;;  %434 = vmatpush3.msk.msra.mxu1 %vm247_vm2, %v160_v1  ;;  %s340_s3 = sshll.u32 %s159_s30, 4  ;;  %s327_s7 = scalar_lea.sflag [#allocation5], %s715_s25  ;;  %s733_s3 = int_to_ptr.vmem [resolvable:$true] %s340_s3 }
  0x3d   : > { %s520_s8 = scalar_lea.vmem %s733_s3, 64  ;;  %p786_p11 = scmp.ne.s32.totalorder %s781_s22, 0 }
  0x3e   : > { %p521_p6 = scmp.ne.s32.totalorder %s733_s3, %s520_s8  ;;  %s591_s0 = smov [#allocation6]  }
  0x3f   : > { %431 = vmatmul.mubr.f32.vlgmr.msra.gmra.mrb[0].mxu0 %v160_v1  ;;  %s524_s9 = sshll.u32 %s591_s0, 4  ;;  %s525_s9 = int_to_ptr.vmem [resolvable:$false] %s524_s9 }
  0x40   : > { %v322_v13 = vstv %s321_s21  ;;  %p522_p12 = pnand %p521_p6, %p786_p11  ;;  %s526_s10 = scalar_lea.vmem %s525_s9, 128 }
  0x41   : > { %p527_p7 = scmp.lt.s32.totalorder %s733_s3, %s525_s9  ;;  %p528_p10 = scmp.lt.s32.totalorder %s526_s10, %s520_s8 }
  0x42   : > { %p523_p13 = pneg %p522_p12 }
  0x43   : > { %p529_p2 = por %p528_p10, %p527_p7 }
  0x45   : > { %p530_p4 = pnand %p529_p2, %p523_p13 }
 0x112   : > { %v227_v2 = vpop.f32.mrb[0].mxu0 }
 0x113   : > { %v432_v3 = vpop.f32.mrb[1].mxu0  ;;  %v232_v4 = vsel %vm231_vm1, %v227_v2, inf }
 0x114   : > { %233 = vmin.xlane.f32.xlu0 %v232_v4 }
 0x1a1   : > { %v234_v5 = vpop.xlane.xlu0 %233 }
 0x1a2   : > { %v235_v6 = vsub.f32 %v234_v5, %v227_v2 }
 0x1a4   : > { %v236_v7 = vmul.f32 1.442695, %v235_v6 }
 0x1a6   : > { %486 = vpow2.f32 %v236_v7 }
 0x1b0   : > { %v487_v8 = vpop.eup %486 }
 0x1b1   : > { %v238_v9 = vsel %vm231_vm1, %v487_v8, 0.0 }
 0x1b2   : > { %239 = vadd.xlane.f32.xlu0 %v238_v9 }
 0x23f   : > { %v240_v10 = vpop.xlane.xlu0 %239 }
 0x240   : > { %488 = vrcp.f32 %v240_v10 }
 0x24a   : > { %v489_v11 = vpop.eup %488 }
 0x24b   : > { %v242_v12 = vmul.f32 %v489_v11, %v487_v8 }
 0x24d   : > { %436 = vmatmul.mubr.msk.f32.vlgmr.msra.gmra.mrb[0].mxu1 %vm243_vm3, %v242_v12 }
 0x320   : > { %v317_v14 = vpop.f32.mrb[0].mxu1 }
 0x321   : > { %v323_v15 = vmul.f32 %v322_v13, %v317_v14  ;;  %v437_v16 = vpop.f32.mrb[1].mxu1 }
 0x323   : > { %v324_v17 = vadd.f32 %v323_v15, %v160_v1 }
 0x325   : > { %325 = vst [vmem:[%s159_s30] sm:$0xf] %v324_v17 }
 0x326   : > { %533 = shalt.err (!%p530_p4)
}
 0x327   : > { %s534_s15 = scalar_lea.hbm %s731_s6, 64  ;;  %s538_s20 = scalar_lea.hbm %s777_s2, 128 }
 0x328   : > { %p535_p5 = scmp.ne.s32.totalorder %s731_s6, %s534_s15  ;;  %p539_p0 = scmp.lt.u32.totalorder %s731_s6, %s777_s2 }
 0x329   : > { %p540_p1 = scmp.lt.u32.totalorder %s538_s20, %s534_s15  ;;  %p542_p6 = scmp.lt.u32.totalorder %s534_s15, %s731_s6 }
 0x32a   : > { %p536_p8 = pnand %p535_p5, %p786_p11 }
 0x32b   : > { %p541_p3 = por %p540_p1, %p539_p0 }
 0x32c   : > { %p537_p9 = pneg %p536_p8 }
 0x32d   : > { %p543_p12 = por %p542_p6, %p541_p3 }
 0x32f   : > { %p544_p13 = pnand %p543_p12, %p537_p9 }
 0x331   : > { %547 = shalt.err (!%p544_p13)
}
 0x332   : > { %440 = dma.vmem_to_hbm [thread:$0]  (%p786_p11), %s733_s3, 64, %s731_s6, %s327_s7  }
 0x333 PF: > { %s352_s26 = sand.u32 1, %s574_s11   ;;  %p787_p7 = scmp.ne.s32.totalorder %s782_s23, 0 }
 0x334   : > { %p788_p10 = scmp.ge.s32.totalorder %s586_s14, 2  ;;  %s353_s27 = scalar_lea.sflag [#allocation5], %s352_s26 }
 0x336   : > { %p447_p2 = pnand %p788_p10, %p787_p7 }
 0x338   : > { %569 = dma.done.wait (!%p447_p2), %s353_s27, 64  }
 0x339   : > { %571 = vsyncadd (!%p447_p2), %s353_s27, 4294967232  ;;  %p16_p4 = scmp.ge.s32.totalorder %s635_s16, 4   ;;  %s789_s11 = smov %s578_s12 }
 0x33a   : > { %s790_s12 = smov %s582_s13  ;;  %s791_s13 = smov %s647_s19 }
 0x33b   : > { %s792_s14 = smov %s635_s16  ;;  %18 = sbr.rel (!%p16_p4) target bundleno = 7 (0x7), region = 73 }
 0x342   :  { %358 = vsyncpa [#allocation4], 1 }
 0x343   :  { %360 = vsyncpa [#allocation4 + $0x1], 1 }
 0x344   :  { %361 = vsyncpa [#allocation5], 1 }
 0x345   :  { %363 = vsyncpa [#allocation5 + $0x1], 1 }

</bundles_post_ra>
